<compile_context>
chip_gen: v6e
topology: v6e:2x2x1
jax: 0.10.0
libtpu: 0.0.40
codegen_flags: <defaults>
</compile_context>

<pallas_src>
import functools
import math

import jax
import jax.numpy as jnp
from jax import lax
from jax.experimental import pallas as pl
from jax.experimental.pallas import tpu as pltpu


def _round_up(x, m):
    return ((x + m - 1) // m) * m


def _proxy_anchor_kernel(
    x_ref,      # (TB, Dp)  f32 embeddings tile            (VMEM, pipelined)
    lab_ref,    # (TB, 1)   i32 labels tile, -1 = pad row   (VMEM, pipelined)
    p_hbm,      # (Cp, Dp)  f32 proxies                     (HBM, pl.ANY)
    out_ref,    # (8, Cp)   f32 per-core partials: rows 0/1/2 = pos/neg/count
    pn_ref,     # (Cp, Dp)  mm_dtype normalized proxies     (VMEM scratch)
    p_acc,      # (1, Cp)   sum over positives of exp(-alpha*cos)
    n_acc,      # (1, Cp)   sum over negatives of exp(+alpha*cos)
    cnt_acc,    # (1, Cp)   per-class positive count
    dma_sem,    # (1,)      DMA semaphore
    *, alpha, mm_dtype,
):
    i = pl.program_id(1)          # inner (batch-tile) axis, "arbitrary"
    tb = x_ref.shape[0]
    cp = pn_ref.shape[0]

    @pl.when(i == 0)
    def _init():
        # Pull the proxies from HBM once per core into a scoped f32 staging
        # buffer, normalize in f32, keep only one persistent bf16 copy.
        def _load_and_normalize(tmp_ref):
            cp_dma = pltpu.make_async_copy(p_hbm, tmp_ref, dma_sem.at[0])
            cp_dma.start()
            cp_dma.wait()
            p = tmp_ref[...]
            inv_n = lax.rsqrt(jnp.sum(p * p, axis=1, keepdims=True) + 1e-12)
            pn_ref[...] = (p * inv_n).astype(mm_dtype)

        pl.run_scoped(_load_and_normalize,
                      pltpu.VMEM(p_hbm.shape, jnp.float32))
        p_acc[...] = jnp.zeros_like(p_acc)
        n_acc[...] = jnp.zeros_like(n_acc)
        cnt_acc[...] = jnp.zeros_like(cnt_acc)

    # L2-normalize the batch tile, folding alpha into the per-row scale
    # (rsqrt + multiply; no sqrt + divide, no per-(b,c) alpha multiply).
    x = x_ref[...]
    x_n = x * (alpha * lax.rsqrt(jnp.sum(x * x, axis=1, keepdims=True) + 1e-12))

    # alpha*cos = (alpha*Xn) @ Pn^T : contract last dims, no transpose,
    # bf16 MXU inputs with f32 accumulation.
    acos = lax.dot_general(
        x_n.astype(mm_dtype), pn_ref[...],
        dimension_numbers=(((1,), (1,)), ((), ())),
        preferred_element_type=jnp.float32,
    )  # (TB, Cp) f32

    lab = lab_ref[...]                                    # (TB, 1) int32
    cls = lax.broadcasted_iota(jnp.int32, (tb, cp), 1)    # (TB, Cp)
    is_pos = cls == lab                                   # False on pad rows (-1)
    is_pad = lab < 0                                      # (TB, 1)

    # Negatives: exactly one exp per (b, c) element; exp(alpha*mrg) is folded
    # into the wrapper epilogue.
    e_neg = jnp.exp(acos)
    n_acc[...] += jnp.sum(
        jnp.where(jnp.logical_or(is_pos, is_pad), 0.0, e_neg),
        axis=0, keepdims=True)

    # Positives: each valid row has exactly one positive class -> gather its
    # alpha*cos per row and take TB exps only (no full-array reciprocal).
    pos_acos = jnp.sum(jnp.where(is_pos, acos, 0.0), axis=1, keepdims=True)  # (TB,1)
    e_pos = jnp.exp(-pos_acos)                                               # (TB,1)
    p_acc[...] += jnp.sum(jnp.where(is_pos, e_pos, 0.0), axis=0, keepdims=True)
    cnt_acc[...] += jnp.sum(jnp.where(is_pos, 1.0, 0.0), axis=0, keepdims=True)

    @pl.when(i == pl.num_programs(1) - 1)
    def _flush():
        # Emit this core's partial sums as a lane-dense (8, Cp) block.
        out_ref[...] = jnp.zeros_like(out_ref)
        out_ref[0:1, :] = p_acc[...]
        out_ref[1:2, :] = n_acc[...]
        out_ref[2:3, :] = cnt_acc[...]


def proxy_anchor_loss(x, proxies, labels, *, nb_classes, mrg=0.1, alpha=32,
                      batch_tile=128, use_bf16_matmul=True):
    """x: (B, D) f32, proxies: (C, D) f32, labels: (B,) int32 -> scalar f32 loss.

    use_bf16_matmul=True feeds the MXU bf16 inputs with f32 accumulation
    (4-8x MXU throughput on v5e/v6e/v7x); set False for bit-closer parity with
    the f32 PyTorch reference (alpha amplifies cos rounding inside exp).
    """
    B, D = x.shape
    C, D2 = proxies.shape
    assert D2 == D and C == nb_classes

    # Lane-dense padding: last dims to multiples of 128, batch tile to 8 sublanes.
    Dp = _round_up(D, 128)
    Cp = _round_up(C, 128)
    TB = min(batch_tile, _round_up(B, 8))
    n_tiles = -(-B // TB)
    num_splits = 2 if n_tiles >= 2 else 1      # leading "parallel" axis (v7x 2 TCs)
    n_inner = -(-n_tiles // num_splits)
    Bp = num_splits * n_inner * TB

    x_p = jnp.pad(x.astype(jnp.float32), ((0, Bp - B), (0, Dp - D)))
    p_p = jnp.pad(proxies.astype(jnp.float32), ((0, Cp - C), (0, Dp - D)))
    lab_p = jnp.pad(labels.astype(jnp.int32).reshape(B, 1),
                    ((0, Bp - B), (0, 0)), constant_values=-1)

    mm_dtype = jnp.bfloat16 if use_bf16_matmul else jnp.float32
    pn_itemsize = 2 if use_bf16_matmul else 4

    # Explicit VMEM budget (v7x physical VMEM is 64 MiB; scoped defaults 16/32 MiB).
    vmem_est = (2 * TB * Dp * 4            # X double buffer
                + 2 * TB * 128 * 4         # labels tiles (lane-padded)
                + Cp * Dp * pn_itemsize    # normalized proxies (persistent)
                + Cp * Dp * 4              # scoped f32 staging at init
                + 6 * TB * Cp * 4          # (TB,Cp) temporaries headroom
                + 2 * TB * Dp * 4          # x_n etc.
                + 8 * Cp * 4 * 4)          # accumulators + output blocks
    vmem_limit = int(min(max(vmem_est * 3 // 2, 32 << 20), 96 << 20))

    kernel = functools.partial(_proxy_anchor_kernel,
                               alpha=float(alpha), mm_dtype=mm_dtype)

    grid_spec = pltpu.PrefetchScalarGridSpec(
        num_scalar_prefetch=0,
        grid=(num_splits, n_inner),
        in_specs=[
            pl.BlockSpec((TB, Dp), lambda c, i: (c * n_inner + i, 0)),  # X tile
            pl.BlockSpec((TB, 1), lambda c, i: (c * n_inner + i, 0)),   # labels
            pl.BlockSpec(memory_space=pl.ANY),                          # proxies in HBM
        ],
        out_specs=pl.BlockSpec((8, Cp), lambda c, i: (c, 0)),
        scratch_shapes=[
            pltpu.VMEM((Cp, Dp), mm_dtype),      # normalized proxies (1 copy)
            pltpu.VMEM((1, Cp), jnp.float32),    # positive-exp accumulator
            pltpu.VMEM((1, Cp), jnp.float32),    # negative-exp accumulator
            pltpu.VMEM((1, Cp), jnp.float32),    # per-class positive count
            pltpu.SemaphoreType.DMA((1,)),       # proxy-load DMA semaphore
        ],
    )

    out = pl.pallas_call(
        kernel,
        grid_spec=grid_spec,
        out_shape=jax.ShapeDtypeStruct((num_splits * 8, Cp), jnp.float32),
        compiler_params=pltpu.CompilerParams(
            dimension_semantics=("parallel", "arbitrary"),
            vmem_limit_bytes=vmem_limit),
        cost_estimate=pl.CostEstimate(
            flops=2 * Bp * Cp * Dp + 3 * Bp * Dp + 3 * Cp * Dp,
            transcendentals=Bp * Cp + Bp,
            bytes_accessed=(Bp * Dp + Cp * Dp + Bp + num_splits * 8 * Cp) * 4),
    )(x_p, lab_p, p_p)

    # O(C) epilogue in plain JAX (per-core partials summed here so both
    # TensorCores can run the heavy part independently on v7x).
    parts = out.reshape(num_splits, 8, Cp)
    acc = jnp.sum(parts, axis=0)
    p_sum = acc[0, :C]
    n_sum = acc[1, :C]
    cnt = acc[2, :C]

    c_mrg = jnp.float32(math.exp(float(alpha) * float(mrg)))  # folded margin factor
    num_valid = jnp.sum((cnt > 0.0).astype(jnp.float32))
    # NOTE: like the PyTorch reference, a batch with no valid positives divides
    # by zero (inf/nan) -- kept for exact parity, no max(1) guard.
    pos_term = jnp.sum(jnp.log1p(c_mrg * p_sum)) / num_valid
    neg_term = jnp.sum(jnp.log1p(c_mrg * n_sum)) / float(nb_classes)
    return pos_term + neg_term


def _reference_loss(x, proxies, labels, nb_classes, mrg, alpha):
    """Pure-JAX port of the PyTorch Proxy_Anchor forward (for validation)."""
    def l2n(v):
        return v / jnp.sqrt(jnp.sum(v * v, axis=1, keepdims=True) + 1e-12)

    cos = l2n(x) @ l2n(proxies).T
    oh = jax.nn.one_hot(labels, nb_classes, dtype=jnp.float32)
    pos_exp = jnp.exp(-alpha * (cos - mrg))
    neg_exp = jnp.exp(alpha * (cos + mrg))
    p_sim = jnp.sum(jnp.where(oh == 1.0, pos_exp, 0.0), axis=0)
    n_sim = jnp.sum(jnp.where(oh == 0.0, neg_exp, 0.0), axis=0)
    num_valid = jnp.sum((jnp.sum(oh, axis=0) != 0.0).astype(jnp.float32))
    return (jnp.sum(jnp.log(1.0 + p_sim)) / num_valid
            + jnp.sum(jnp.log(1.0 + n_sim)) / nb_classes)


if __name__ == "__main__":
    nb_classes = 16
    sz_embed = 32
    batch = 24

    key = jax.random.PRNGKey(0)
    kx, kp, kt = jax.random.split(key, 3)

    # embeddings
    x = jax.random.normal(kx, (batch, sz_embed), dtype=jnp.float32)

    # proxies: kaiming_normal_(mode='fan_out') on (nb_classes, sz_embed)
    # -> std = sqrt(2 / nb_classes)   (module init kept as host-side glue)
    proxies = jax.random.normal(kp, (nb_classes, sz_embed), dtype=jnp.float32) * jnp.sqrt(
        2.0 / nb_classes)

    # integer labels in [0, nb_classes)
    labels = jax.random.randint(kt, (batch,), 0, nb_classes, dtype=jnp.int32)

    # batch_tile=8 at this tiny size exercises multi-tile + padded rows + the
    # 2-way parallel split (TB must stay a multiple of 8 sublanes).
    loss = proxy_anchor_loss(
        x, proxies, labels, nb_classes=nb_classes, mrg=0.1, alpha=32,
        batch_tile=8)
    loss = jax.block_until_ready(loss)

    ref = jax.block_until_ready(
        _reference_loss(x, proxies, labels, nb_classes, 0.1, 32.0))
    rel = abs(float(loss) - float(ref)) / max(abs(float(ref)), 1e-6)
    assert rel < 5e-2, f"mismatch: kernel={float(loss)} ref={float(ref)} rel={rel}"
    print("KERNEL_OK")
</pallas_src>

<mosaic_0001>
module attributes {stable_mosaic.version = 11 : i64} {
  func.func @_proxy_anchor_kernel(%arg0: i32, %arg1: i32, %arg2: memref<8x128xf32, #tpu.memory_space<vmem>>, %arg3: memref<8x1xi32, #tpu.memory_space<vmem>>, %arg4: memref<128x128xf32, #tpu.memory_space<any>>, %arg5: memref<8x128xf32, #tpu.memory_space<vmem>>, %arg6: memref<128x128xbf16, #tpu.memory_space<vmem>>, %arg7: memref<1x128xf32, #tpu.memory_space<vmem>>, %arg8: memref<1x128xf32, #tpu.memory_space<vmem>>, %arg9: memref<1x128xf32, #tpu.memory_space<vmem>>, %arg10: memref<1x!tpu.dma_semaphore, #tpu.memory_space<semaphore_mem>>) attributes {dimension_semantics = [#tpu.dimension_semantics<parallel>, #tpu.dimension_semantics<arbitrary>], iteration_bounds = array<i64: 2, 2>, scalar_prefetch = 0 : i64, scratch_operands = 5 : i64, tpu.core_type = #tpu.core_type<tc>, window_params = [{transform_indices = @transform_0, window_bounds = array<i64: 8, 128>}, {transform_indices = @transform_1, window_bounds = array<i64: 8, 1>}, {}, {transform_indices = @transform_3, window_bounds = array<i64: 8, 128>}]} {
    %c0_i32 = arith.constant 0 : i32
    %0 = arith.cmpi eq, %arg1, %c0_i32 : i32
    %1 = arith.extui %0 : i1 to i32
    %c0_i32_0 = arith.constant 0 : i32
    %2 = arith.cmpi ne, %1, %c0_i32_0 : i32
    scf.if %2 {
      "tpu.region"() ({
        %alloca = memref.alloca() : memref<128x128xf32, #tpu.memory_space<vmem>>
        %c0_i32_42 = arith.constant 0 : i32
        %66 = tpu.memref_slice %arg10[%c0_i32_42] : memref<1x!tpu.dma_semaphore, #tpu.memory_space<semaphore_mem>> -> memref<1x!tpu.dma_semaphore, #tpu.memory_space<semaphore_mem>>
        %67 = tpu.memref_squeeze %66 : memref<1x!tpu.dma_semaphore, #tpu.memory_space<semaphore_mem>> -> memref<!tpu.dma_semaphore, #tpu.memory_space<semaphore_mem>>
        tpu.enqueue_dma source(%arg4 : memref<128x128xf32, #tpu.memory_space<any>>) target(%alloca : memref<128x128xf32, #tpu.memory_space<vmem>>) target_semaphore(%67 : memref<!tpu.dma_semaphore, #tpu.memory_space<semaphore_mem>>)
        %c0_i32_43 = arith.constant 0 : i32
        %68 = tpu.memref_slice %arg10[%c0_i32_43] : memref<1x!tpu.dma_semaphore, #tpu.memory_space<semaphore_mem>> -> memref<1x!tpu.dma_semaphore, #tpu.memory_space<semaphore_mem>>
        %69 = tpu.memref_squeeze %68 : memref<1x!tpu.dma_semaphore, #tpu.memory_space<semaphore_mem>> -> memref<!tpu.dma_semaphore, #tpu.memory_space<semaphore_mem>>
        tpu.wait_dma2 semaphore(%69 : memref<!tpu.dma_semaphore, #tpu.memory_space<semaphore_mem>>) src(%arg4 : memref<128x128xf32, #tpu.memory_space<any>>) dst(%alloca : memref<128x128xf32, #tpu.memory_space<vmem>>)
        %c0_44 = arith.constant 0 : index
        %c0_45 = arith.constant 0 : index
        %70 = vector.load %alloca[%c0_44, %c0_45] : memref<128x128xf32, #tpu.memory_space<vmem>>, vector<128x128xf32>
        %71 = arith.mulf %70, %70 : vector<128x128xf32>
        %cst_46 = arith.constant dense<0.000000e+00> : vector<128xf32>
        %72 = vector.multi_reduction <add>, %71, %cst_46 [1] : vector<128x128xf32> to vector<128xf32>
        %73 = vector.shape_cast %72 : vector<128xf32> to vector<128x1xf32>
        %cst_47 = arith.constant 9.99999996E-13 : f32
        %74 = vector.broadcast %cst_47 : f32 to vector<128x1xf32>
        %75 = arith.addf %73, %74 : vector<128x1xf32>
        %76 = math.rsqrt %75 : vector<128x1xf32>
        %77 = vector.broadcast %76 : vector<128x1xf32> to vector<128x128xf32>
        %78 = arith.mulf %70, %77 : vector<128x128xf32>
        %79 = arith.truncf %78 : vector<128x128xf32> to vector<128x128xbf16>
        %c0_48 = arith.constant 0 : index
        %c0_49 = arith.constant 0 : index
        %80 = vector.load %arg6[%c0_48, %c0_49] : memref<128x128xbf16, #tpu.memory_space<vmem>>, vector<128x128xbf16>
        tpu.vector_store %arg6[%c0_48, %c0_49], %79 {strides = array<i32>} : memref<128x128xbf16, #tpu.memory_space<vmem>>, vector<128x128xbf16>,
        tpu.yield
      }) : () -> ()
      %cst_33 = arith.constant 0.000000e+00 : f32
      %60 = vector.broadcast %cst_33 : f32 to vector<1x128xf32>
      %c0_34 = arith.constant 0 : index
      %c0_35 = arith.constant 0 : index
      %61 = vector.load %arg7[%c0_34, %c0_35] : memref<1x128xf32, #tpu.memory_space<vmem>>, vector<1x128xf32>
      tpu.vector_store %arg7[%c0_34, %c0_35], %60 {strides = array<i32>} : memref<1x128xf32, #tpu.memory_space<vmem>>, vector<1x128xf32>,
      %cst_36 = arith.constant 0.000000e+00 : f32
      %62 = vector.broadcast %cst_36 : f32 to vector<1x128xf32>
      %c0_37 = arith.constant 0 : index
      %c0_38 = arith.constant 0 : index
      %63 = vector.load %arg8[%c0_37, %c0_38] : memref<1x128xf32, #tpu.memory_space<vmem>>, vector<1x128xf32>
      tpu.vector_store %arg8[%c0_37, %c0_38], %62 {strides = array<i32>} : memref<1x128xf32, #tpu.memory_space<vmem>>, vector<1x128xf32>,
      %cst_39 = arith.constant 0.000000e+00 : f32
      %64 = vector.broadcast %cst_39 : f32 to vector<1x128xf32>
      %c0_40 = arith.constant 0 : index
      %c0_41 = arith.constant 0 : index
      %65 = vector.load %arg9[%c0_40, %c0_41] : memref<1x128xf32, #tpu.memory_space<vmem>>, vector<1x128xf32>
      tpu.vector_store %arg9[%c0_40, %c0_41], %64 {strides = array<i32>} : memref<1x128xf32, #tpu.memory_space<vmem>>, vector<1x128xf32>,
    } else {
    }
    %c0 = arith.constant 0 : index
    %c0_1 = arith.constant 0 : index
    %3 = vector.load %arg2[%c0, %c0_1] : memref<8x128xf32, #tpu.memory_space<vmem>>, vector<8x128xf32>
    %4 = arith.mulf %3, %3 : vector<8x128xf32>
    %cst = arith.constant dense<0.000000e+00> : vector<8xf32>
    %5 = vector.multi_reduction <add>, %4, %cst [1] : vector<8x128xf32> to vector<8xf32>
    %6 = vector.shape_cast %5 : vector<8xf32> to vector<8x1xf32>
    %cst_2 = arith.constant 9.99999996E-13 : f32
    %7 = vector.broadcast %cst_2 : f32 to vector<8x1xf32>
    %8 = arith.addf %6, %7 : vector<8x1xf32>
    %9 = math.rsqrt %8 : vector<8x1xf32>
    %cst_3 = arith.constant 3.200000e+01 : f32
    %10 = vector.broadcast %cst_3 : f32 to vector<8x1xf32>
    %11 = arith.mulf %10, %9 : vector<8x1xf32>
    %12 = vector.broadcast %11 : vector<8x1xf32> to vector<8x128xf32>
    %13 = arith.mulf %3, %12 : vector<8x128xf32>
    %14 = arith.truncf %13 : vector<8x128xf32> to vector<8x128xbf16>
    %c0_4 = arith.constant 0 : index
    %c0_5 = arith.constant 0 : index
    %15 = vector.load %arg6[%c0_4, %c0_5] : memref<128x128xbf16, #tpu.memory_space<vmem>>, vector<128x128xbf16>
    %cst_6 = arith.constant dense<0.000000e+00> : vector<8x128xf32>
    %16 = tpu.matmul %14, %15, %cst_6 {dimension_numbers = #tpu.dot_dimension_numbers<[1], [1], [0], [0], [0, 0, 1, 0], [], []>} : vector<8x128xbf16>, vector<128x128xbf16>, vector<8x128xf32> -> vector<8x128xf32>
    %c0_7 = arith.constant 0 : index
    %c0_8 = arith.constant 0 : index
    %17 = vector.load %arg3[%c0_7, %c0_8] : memref<8x1xi32, #tpu.memory_space<vmem>>, vector<8x1xi32>
    %18 = tpu.iota {dimensions = array<i32: 1>} : vector<8x128xi32>
    %19 = vector.broadcast %17 : vector<8x1xi32> to vector<8x128xi32>
    %20 = arith.cmpi eq, %18, %19 : vector<8x128xi32>
    %c0_i32_9 = arith.constant 0 : i32
    %21 = vector.broadcast %c0_i32_9 : i32 to vector<8x1xi32>
    %22 = arith.cmpi slt, %17, %21 : vector<8x1xi32>
    %23 = math.exp %16 : vector<8x128xf32>
    %c0_10 = arith.constant 0 : index
    %c0_11 = arith.constant 0 : index
    %24 = vector.load %arg8[%c0_10, %c0_11] : memref<1x128xf32, #tpu.memory_space<vmem>>, vector<1x128xf32>
    %25 = vector.broadcast %22 : vector<8x1xi1> to vector<8x128xi1>
    %26 = arith.ori %20, %25 : vector<8x128xi1>
    %cst_12 = arith.constant 0.000000e+00 : f32
    %27 = vector.broadcast %cst_12 : f32 to vector<8x128xf32>
    %28 = arith.select %26, %27, %23 : vector<8x128xi1>, vector<8x128xf32>
    %cst_13 = arith.constant dense<0.000000e+00> : vector<128xf32>
    %29 = vector.multi_reduction <add>, %28, %cst_13 [0] : vector<8x128xf32> to vector<128xf32>
    %30 = vector.shape_cast %29 : vector<128xf32> to vector<1x128xf32>
    %31 = arith.addf %24, %30 : vector<1x128xf32>
    %c0_14 = arith.constant 0 : index
    %c0_15 = arith.constant 0 : index
    %32 = vector.load %arg8[%c0_14, %c0_15] : memref<1x128xf32, #tpu.memory_space<vmem>>, vector<1x128xf32>
    tpu.vector_store %arg8[%c0_14, %c0_15], %31 {strides = array<i32>} : memref<1x128xf32, #tpu.memory_space<vmem>>, vector<1x128xf32>,
    %cst_16 = arith.constant 0.000000e+00 : f32
    %33 = vector.broadcast %cst_16 : f32 to vector<8x128xf32>
    %34 = arith.select %20, %16, %33 : vector<8x128xi1>, vector<8x128xf32>
    %cst_17 = arith.constant dense<0.000000e+00> : vector<8xf32>
    %35 = vector.multi_reduction <add>, %34, %cst_17 [1] : vector<8x128xf32> to vector<8xf32>
    %36 = vector.shape_cast %35 : vector<8xf32> to vector<8x1xf32>
    %cst_18 = arith.constant 0.000000e+00 : f32
    %37 = vector.broadcast %cst_18 : f32 to vector<8x1xf32>
    %38 = arith.subf %37, %36 : vector<8x1xf32>
    %39 = math.exp %38 : vector<8x1xf32>
    %c0_19 = arith.constant 0 : index
    %c0_20 = arith.constant 0 : index
    %40 = vector.load %arg7[%c0_19, %c0_20] : memref<1x128xf32, #tpu.memory_space<vmem>>, vector<1x128xf32>
    %cst_21 = arith.constant 0.000000e+00 : f32
    %41 = vector.shape_cast %39 : vector<8x1xf32> to vector<8x1xf32>
    %42 = vector.broadcast %41 : vector<8x1xf32> to vector<8x128xf32>
    %43 = vector.broadcast %cst_21 : f32 to vector<8x128xf32>
    %44 = arith.select %20, %42, %43 : vector<8x128xi1>, vector<8x128xf32>
    %cst_22 = arith.constant dense<0.000000e+00> : vector<128xf32>
    %45 = vector.multi_reduction <add>, %44, %cst_22 [0] : vector<8x128xf32> to vector<128xf32>
    %46 = vector.shape_cast %45 : vector<128xf32> to vector<1x128xf32>
    %47 = arith.addf %40, %46 : vector<1x128xf32>
    %c0_23 = arith.constant 0 : index
    %c0_24 = arith.constant 0 : index
    %48 = vector.load %arg7[%c0_23, %c0_24] : memref<1x128xf32, #tpu.memory_space<vmem>>, vector<1x128xf32>
    tpu.vector_store %arg7[%c0_23, %c0_24], %47 {strides = array<i32>} : memref<1x128xf32, #tpu.memory_space<vmem>>, vector<1x128xf32>,
    %c0_25 = arith.constant 0 : index
    %c0_26 = arith.constant 0 : index
    %49 = vector.load %arg9[%c0_25, %c0_26] : memref<1x128xf32, #tpu.memory_space<vmem>>, vector<1x128xf32>
    %cst_27 = arith.constant 1.000000e+00 : f32
    %cst_28 = arith.constant 0.000000e+00 : f32
    %50 = vector.broadcast %cst_27 : f32 to vector<8x128xf32>
    %51 = vector.broadcast %cst_28 : f32 to vector<8x128xf32>
    %52 = arith.select %20, %50, %51 : vector<8x128xi1>, vector<8x128xf32>
    %cst_29 = arith.constant dense<0.000000e+00> : vector<128xf32>
    %53 = vector.multi_reduction <add>, %52, %cst_29 [0] : vector<8x128xf32> to vector<128xf32>
    %54 = vector.shape_cast %53 : vector<128xf32> to vector<1x128xf32>
    %55 = arith.addf %49, %54 : vector<1x128xf32>
    %c0_30 = arith.constant 0 : index
    %c0_31 = arith.constant 0 : index
    %56 = vector.load %arg9[%c0_30, %c0_31] : memref<1x128xf32, #tpu.memory_space<vmem>>, vector<1x128xf32>
    tpu.vector_store %arg9[%c0_30, %c0_31], %55 {strides = array<i32>} : memref<1x128xf32, #tpu.memory_space<vmem>>, vector<1x128xf32>,
    %c1_i32 = arith.constant 1 : i32
    %57 = arith.cmpi eq, %arg1, %c1_i32 : i32
    %58 = arith.extui %57 : i1 to i32
    %c0_i32_32 = arith.constant 0 : i32
    %59 = arith.cmpi ne, %58, %c0_i32_32 : i32
    scf.if %59 {
      %cst_33 = arith.constant 0.000000e+00 : f32
      %60 = vector.broadcast %cst_33 : f32 to vector<8x128xf32>
      %c0_34 = arith.constant 0 : index
      %c0_35 = arith.constant 0 : index
      %61 = vector.load %arg5[%c0_34, %c0_35] : memref<8x128xf32, #tpu.memory_space<vmem>>, vector<8x128xf32>
      tpu.vector_store %arg5[%c0_34, %c0_35], %60 {strides = array<i32>} : memref<8x128xf32, #tpu.memory_space<vmem>>, vector<8x128xf32>,
      %c0_36 = arith.constant 0 : index
      %c0_37 = arith.constant 0 : index
      %62 = vector.load %arg7[%c0_36, %c0_37] : memref<1x128xf32, #tpu.memory_space<vmem>>, vector<1x128xf32>
      %c0_38 = arith.constant 0 : index
      %c0_39 = arith.constant 0 : index
      %63 = vector.load %arg5[%c0_38, %c0_39] : memref<8x128xf32, #tpu.memory_space<vmem>>, vector<1x128xf32>
      tpu.vector_store %arg5[%c0_38, %c0_39], %62 {strides = array<i32>} : memref<8x128xf32, #tpu.memory_space<vmem>>, vector<1x128xf32>,
      %c0_40 = arith.constant 0 : index
      %c0_41 = arith.constant 0 : index
      %64 = vector.load %arg8[%c0_40, %c0_41] : memref<1x128xf32, #tpu.memory_space<vmem>>, vector<1x128xf32>
      %c1 = arith.constant 1 : index
      %c0_42 = arith.constant 0 : index
      %65 = vector.load %arg5[%c1, %c0_42] : memref<8x128xf32, #tpu.memory_space<vmem>>, vector<1x128xf32>
      tpu.vector_store %arg5[%c1, %c0_42], %64 {strides = array<i32>} : memref<8x128xf32, #tpu.memory_space<vmem>>, vector<1x128xf32>,
      %c0_43 = arith.constant 0 : index
      %c0_44 = arith.constant 0 : index
      %66 = vector.load %arg9[%c0_43, %c0_44] : memref<1x128xf32, #tpu.memory_space<vmem>>, vector<1x128xf32>
      %c2 = arith.constant 2 : index
      %c0_45 = arith.constant 0 : index
      %67 = vector.load %arg5[%c2, %c0_45] : memref<8x128xf32, #tpu.memory_space<vmem>>, vector<1x128xf32>
      tpu.vector_store %arg5[%c2, %c0_45], %66 {strides = array<i32>} : memref<8x128xf32, #tpu.memory_space<vmem>>, vector<1x128xf32>,
    } else {
    }
    return
  }
  func.func @transform_0(%arg0: i32, %arg1: i32) -> (i32, i32) {
    %c2_i32 = arith.constant 2 : i32
    %0 = arith.muli %arg0, %c2_i32 : i32
    %1 = arith.addi %0, %arg1 : i32
    %c0_i32 = arith.constant 0 : i32
    %c0_i32_0 = arith.constant 0 : i32
    return %1, %c0_i32 : i32, i32
  }
  func.func @transform_1(%arg0: i32, %arg1: i32) -> (i32, i32) {
    %c2_i32 = arith.constant 2 : i32
    %0 = arith.muli %arg0, %c2_i32 : i32
    %1 = arith.addi %0, %arg1 : i32
    %c0_i32 = arith.constant 0 : i32
    %c0_i32_0 = arith.constant 0 : i32
    return %1, %c0_i32 : i32, i32
  }
  func.func @transform_3(%arg0: i32, %arg1: i32) -> (i32, i32) {
    %c0_i32 = arith.constant 0 : i32
    %c0_i32_0 = arith.constant 0 : i32
    return %arg0, %c0_i32 : i32, i32
  }
}

</mosaic_0001>

<bundles_post_ra>
// kernel: tpu_custom_call.1
= control target key start
LH: loop header
LB: loop body
LE: loop exit
PB: predicated region body
PF: predicated region fallthrough
CT: control target
= control target key end

     0   :  { %8 = vsyncpa [#allocation8], 0  ;;  %s1322_s0 = inlined_call_operand.vmem [shape: f32[32,128], index: 0, kind: input, shape index: {}]   ;;  %s1323_s1 = inlined_call_operand.vmem [shape: s32[32,1], index: 1, kind: input, shape index: {}]   ;;  %s1324_s2 = inlined_call_operand.hbm [shape: f32[128,128], index: 2, kind: input, shape index: {}]   ;;  %s1325_s3 = inlined_call_operand.hbm [shape: f32[16,128], index: 3, kind: output, shape index: {}]  }
   0x1   :  { %10 = vsyncpa [#allocation8 + $0x1], 0  ;;  %s1094_s12 = smov 0   ;;  %s1096_s13 = smov 0  }
   0x2   :  { %s1098_s14 = smov 0   ;;  %s1100_s15 = smov 0  }
   0x3   :  { %s1102_s16 = smov 0   ;;  %s1104_s17 = smov 0  }
   0x4   :  { %s1106_s18 = smov 0   ;;  %s1108_s19 = smov 0  }
   0x5 LB: > { %s689_s20 = sadd.s32 4294967295, %s1065_s19   ;;  %s690_s21 = sadd.s32 4294967294, %s1065_s19   ;;  %s1065_s19 = sphi %s1108_s19, %s16_s19   ;;  %s1061_s18 = sphi %s1106_s18, %s1334_s18   ;;  %s1057_s17 = sphi %s1104_s17, %s1333_s17   ;;  %s1053_s16 = sphi %s1102_s16, %s1332_s16   ;;  %s1049_s15 = sphi %s1100_s15, %s1331_s15   ;;  %s1045_s14 = sphi %s1098_s14, %s1330_s14   ;;  %s1041_s13 = sphi %s1096_s13, %s1329_s13   ;;  %s1037_s12 = sphi %s1094_s12, %s1328_s12  }
   0x6   : > { %s25_s22 = sadd.s32 1, %s1057_s17  ;;  %s28_s23 = sadd.s32 1, %s1061_s18 }
   0x7   : > { %p26_p0 = scmp.ge.s32.totalorder %s25_s22, 2  ;;  %p105_p1 = scmp.ne.s32.totalorder %s1045_s14, %s1041_s13 }
   0x8   : > { %p106_p2 = scmp.eq.s32.totalorder %s689_s20, 3  ;;  %p111_p4 = scmp.ne.s32.totalorder %s1041_s13, %s1037_s12 }
   0x9   : > { %s1336_s22 = smov (%p26_p0, %s25_s22), 0  ;;  %s1338_s23 = smov (!%p26_p0, %s28_s23), %s1061_s18 }
   0xa   : > { %p1143_p3 = por %p106_p2, %p105_p1  ;;  %p30_p5 = scmp.ge.s32.totalorder %s1338_s23, 2 }
   0xb   : > { %p112_p6 = scmp.eq.s32.totalorder %s690_s21, 3  ;;  %p697_p7 = scmp.ge.s32.totalorder %s1065_s19, 1 }
   0xc   : > { %p152_p8 = scmp.lt.s32.totalorder %s1065_s19, 5  ;;  %s1340_s23 = smov (%p30_p5, %s1338_s23), 0 }
   0xd   : > { %p1153_p9 = por %p112_p6, %p111_p4  ;;  %s92_s26 = ssub.s32 %s1061_s18, %s1340_s23 }
   0xe   : > { %p153_p10 = pnand %p697_p7, %p152_p8  ;;  %s95_s27 = sadd.s32 1, %s1045_s14 }
   0xf   : > { %p93_p11 = scmp.eq.s32.totalorder %s92_s26, 0  ;;  %s178_s29 = sand.u32 (!%p153_p10), 1, %s1041_s13  }
  0x10   : > { %156 = sbr.rel (%p153_p10) target bundleno = 790 (0x316), region = 28  ;;  %s699_s30 = sshll.u32 (!%p153_p10), %s1053_s16, 1 }
  0x11   : > { %s1161_s28 = scalar_select %p93_p11, %s1045_s14, %s95_s27  }
  0x12   : > { %s698_s4 = sshll.u32 (!%p153_p10), %s178_s29, 3  ;;  %s182_s5 = sadd.s32 (!%p153_p10), %s1049_s15, %s699_s30 }
  0x13   : > { %p183_p12 = scmp.lt.s32.totalorder (!%p153_p10), %s182_s5, 3  ;;  %s1178_s21 = scalar_lea.vmem (!%p153_p10), [#allocation7], %s698_s4 }
  0x14   : > { %p703_p13 = scmp.ne.s32.totalorder (!%p153_p10), %s1049_s15, 0 }
  0x15   : > { %s1342_s5 = smov (!%p183_p12, %s182_s5), 3 }
  0x16   : > { %s700_s6 = sshll.u32 %s1342_s5, 3  ;;  %201 = sbr.rel (%p703_p13) target bundleno = 230 (0xe6), region = 32 }
  0x17   : > { %s1171_s9 = scalar_lea.vmem %s1322_s0, %s700_s6  ;;  %s1176_s20 = scalar_lea.vmem %s1323_s1, %s700_s6 }
  0x1b   : > { %s1067_s26 = smov [#allocation9]  }
  0x1c   : > { %s209_s27 = sshll.u32 %s1067_s26, 4  ;;  %s210_s27 = int_to_ptr.vmem [resolvable:$true] %s209_s27 }
  0x1d   : > { %s959_s30 = scalar_lea.vmem %s210_s27, 2048  ;;  %p964_p1 = scmp.lt.s32.totalorder %s210_s27, %s210_s27 }
  0x1e   : > { %p960_p0 = scmp.ne.s32.totalorder %s210_s27, %s959_s30  ;;  %p965_p2 = scmp.lt.s32.totalorder %s959_s30, %s959_s30 }
  0x20   : > { %p966_p4 = por %p965_p2, %p964_p1 }
  0x22   : > { %p967_p5 = pnand %p966_p4, %p960_p0 }
  0x24   : > { %970 = shalt.err (!%p967_p5)  }
  0x25   : > { %212 = dma.hbm_to_vmem [thread:$0]  %s1324_s2, 2048, %s210_s27, [#allocation6] }
  0x26   : > { %1029 = dma.done.wait [#allocation6], 2048 }
  0x27   : > { %1030 = vsyncadd [#allocation6], 4294965248  ;;  %v1184_v0 = vld [vmem:[#allocation9 + $0x10] sm:$0xff]  ;;  %v1186_v1 = vld [vmem:[#allocation9] sm:$0xff] }
  0x28   : > { %v1188_v2 = vld [vmem:[#allocation9 + $0x18] sm:$0xff]  ;;  %v234_v3 = vmul.f32 %v1184_v0, %v1184_v0  ;;  %v232_v4 = vmul.f32 %v1186_v1, %v1186_v1  ;;  %v1194_v5 = vld [vmem:[#allocation9 + $0x8] sm:$0xff]  ;;  %v1202_v9 = vld [vmem:[#allocation9 + $0x20] sm:$0xff] }
  0x29   : > { %v235_v6 = vmul.f32 %v1188_v2, %v1188_v2  ;;  %v233_v7 = vmul.f32 %v1194_v5, %v1194_v5  ;;  %v1200_v8 = vld [vmem:[#allocation9 + $0x28] sm:$0xff]  ;;  %v236_v11 = vmul.f32 %v1202_v9, %v1202_v9  ;;  %v1208_v12 = vld [vmem:[#allocation9 + $0x38] sm:$0xff]  ;;  %v1210_v13 = vld [vmem:[#allocation9 + $0x30] sm:$0xff] }
  0x2a   : > { %252 = vadd.xlane.f32.xlu1 %v234_v3  ;;  %248 = vadd.xlane.f32.xlu0 %v232_v4  ;;  %v237_v10 = vmul.f32 %v1200_v8, %v1200_v8  ;;  %v239_v14 = vmul.f32 %v1208_v12, %v1208_v12  ;;  %v238_v15 = vmul.f32 %v1210_v13, %v1210_v13  ;;  %v1216_v16 = vld [vmem:[#allocation9 + $0x48] sm:$0xff]  ;;  %v1218_v17 = vld [vmem:[#allocation9 + $0x40] sm:$0xff]  ;;  %v1224_v20 = vld [vmem:[#allocation9 + $0x58] sm:$0xff] }
  0x2b   : > { %v241_v18 = vmul.f32 %v1216_v16, %v1216_v16  ;;  %v240_v19 = vmul.f32 %v1218_v17, %v1218_v17  ;;  %v1226_v21 = vld [vmem:[#allocation9 + $0x50] sm:$0xff]  ;;  %v243_v22 = vmul.f32 %v1224_v20, %v1224_v20  ;;  %v1232_v24 = vld [vmem:[#allocation9 + $0x68] sm:$0xff]  ;;  %v1234_v25 = vld [vmem:[#allocation9 + $0x60] sm:$0xff] }
  0x2c   : > { %v242_v23 = vmul.f32 %v1226_v21, %v1226_v21  ;;  %v245_v26 = vmul.f32 %v1232_v24, %v1232_v24  ;;  %v244_v27 = vmul.f32 %v1234_v25, %v1234_v25  ;;  %v1240_v28 = vld [vmem:[#allocation9 + $0x78] sm:$0xff]  ;;  %v1242_v29 = vld [vmem:[#allocation9 + $0x70] sm:$0xff] }
  0x2d   : > { %v247_v30 = vmul.f32 %v1240_v28, %v1240_v28  ;;  %v246_v31 = vmul.f32 %v1242_v29, %v1242_v29 }
  0x2e   : > { %254 = vadd.xlane.f32.xlu1 %v235_v6  ;;  %250 = vadd.xlane.f32.xlu0 %v233_v7 }
  0x32   : > { %258 = vadd.xlane.f32.xlu1 %v237_v10  ;;  %256 = vadd.xlane.f32.xlu0 %v236_v11 }
  0x36   : > { %262 = vadd.xlane.f32.xlu1 %v239_v14  ;;  %260 = vadd.xlane.f32.xlu0 %v238_v15 }
  0x3a   : > { %266 = vadd.xlane.f32.xlu1 %v241_v18  ;;  %264 = vadd.xlane.f32.xlu0 %v240_v19 }
  0x3e   : > { %270 = vadd.xlane.f32.xlu1 %v243_v22  ;;  %268 = vadd.xlane.f32.xlu0 %v242_v23 }
  0x42   : > { %274 = vadd.xlane.f32.xlu1 %v245_v26  ;;  %272 = vadd.xlane.f32.xlu0 %v244_v27 }
  0x46   : > { %278 = vadd.xlane.f32.xlu1 %v247_v30  ;;  %276 = vadd.xlane.f32.xlu0 %v246_v31 }
  0xb3   : > { %v253_v32 = vpop.xlane.xlu1 %252  ;;  %v249_v33 = vpop.xlane.xlu0 %248 }
  0xb4   : > { %v282_v34 = vadd.f32 1e-12, %v253_v32  ;;  %v280_v35 = vadd.f32 1e-12, %v249_v33 }
  0xb6   : > { %903 = vrsqrt.f32 %v282_v34 }
  0xb7   : > { %v255_v36 = vpop.xlane.xlu1 %254  ;;  %v251_v37 = vpop.xlane.xlu0 %250  ;;  %905 = vrsqrt.f32 %v280_v35 }
  0xb8   : > { %v283_v38 = vadd.f32 1e-12, %v255_v36  ;;  %v281_v39 = vadd.f32 1e-12, %v251_v37 }
  0xba   : > { %907 = vrsqrt.f32 %v283_v38 }
  0xbb   : > { %909 = vrsqrt.f32 %v281_v39  ;;  %v259_v40 = vpop.xlane.xlu1 %258  ;;  %v257_v41 = vpop.xlane.xlu0 %256 }
  0xbc   : > { %v285_v42 = vadd.f32 1e-12, %v259_v40  ;;  %v284_v43 = vadd.f32 1e-12, %v257_v41 }
  0xbe   : > { %911 = vrsqrt.f32 %v285_v42 }
  0xbf   : > { %913 = vrsqrt.f32 %v284_v43  ;;  %v263_v44 = vpop.xlane.xlu1 %262  ;;  %v261_v45 = vpop.xlane.xlu0 %260 }
  0xc0   : > { %v287_v46 = vadd.f32 1e-12, %v263_v44  ;;  %v286_v47 = vadd.f32 1e-12, %v261_v45  ;;  %v1068_v45 = vmov 0.0  }
  0xc1   : > { %408 = vst [vmem:[#allocation3] sm:$0x1] %v1068_v45  ;;  %409 = vst [vmem:[#allocation4] sm:$0x1] %v1068_v45 }
  0xc2   : > { %915 = vrsqrt.f32 %v287_v46  ;;  %410 = vst [vmem:[#allocation5] sm:$0x1] %v1068_v45 }
  0xc3   : > { %917 = vrsqrt.f32 %v286_v47  ;;  %v267_v48 = vpop.xlane.xlu1 %266  ;;  %v265_v49 = vpop.xlane.xlu0 %264 }
  0xc4   : > { %v289_v50 = vadd.f32 1e-12, %v267_v48  ;;  %v288_v51 = vadd.f32 1e-12, %v265_v49  ;;  %v904_v52 = vpop.eup %903 }
  0xc5   : > { %v906_v53 = vpop.eup %905  ;;  %v314_v58 = vmul.f32 %v904_v52, %v1184_v0 }
  0xc6   : > { %919 = vrsqrt.f32 %v289_v50  ;;  %v312_v62 = vmul.f32 %v906_v53, %v1186_v1 }
  0xc7   : > { %v908_v54 = vpop.eup %907  ;;  %921 = vrsqrt.f32 %v288_v51  ;;  %v271_v55 = vpop.xlane.xlu1 %270 }
  0xc8   : > { %v269_v56 = vpop.xlane.xlu0 %268  ;;  %v910_v57 = vpop.eup %909  ;;  %v315_v59 = vmul.f32 %v908_v54, %v1188_v2  ;;  %v291_v60 = vadd.f32 1e-12, %v271_v55 }
  0xc9   : > { %v290_v61 = vadd.f32 1e-12, %v269_v56  ;;  %v313_v63 = vmul.f32 %v910_v57, %v1194_v5 }
  0xca   : > { %v758_v3 = vpack.c.bf16 %v315_v59, %v314_v58  ;;  %923 = vrsqrt.f32 %v291_v60 }
  0xcb   : > { %v912_v4 = vpop.eup %911  ;;  %v753_v6 = vpack.c.bf16 %v313_v63, %v312_v62  ;;  %925 = vrsqrt.f32 %v290_v61  ;;  %v275_v7 = vpop.xlane.xlu1 %274 }
  0xcc   : > { %v273_v10 = vpop.xlane.xlu0 %272  ;;  %v914_v11 = vpop.eup %913  ;;  %790 = vst [vmem:[#allocation2 + $0x8] sm:$0xff] %v758_v3   ;;  %v317_v14 = vmul.f32 %v912_v4, %v1200_v8  ;;  %v293_v0 = vadd.f32 1e-12, %v275_v7 }
  0xcd   : > { %v292_v15 = vadd.f32 1e-12, %v273_v10  ;;  %754 = vst [vmem:[#allocation2] sm:$0xff] %v753_v6   ;;  %v316_v2 = vmul.f32 %v914_v11, %v1202_v9 }
  0xce   : > { %927 = vrsqrt.f32 %v293_v0 }
  0xcf   : > { %v916_v1 = vpop.eup %915  ;;  %v763_v18 = vpack.c.bf16 %v317_v14, %v316_v2  ;;  %929 = vrsqrt.f32 %v292_v15  ;;  %v279_v5 = vpop.xlane.xlu1 %278 }
  0xd0   : > { %v277_v19 = vpop.xlane.xlu0 %276  ;;  %v918_v22 = vpop.eup %917  ;;  %v319_v23 = vmul.f32 %v916_v1, %v1208_v12  ;;  %v295_v26 = vadd.f32 1e-12, %v279_v5 }
  0xd1   : > { %v294_v27 = vadd.f32 1e-12, %v277_v19  ;;  %791 = vst [vmem:[#allocation2 + $0x10] sm:$0xff] %v763_v18   ;;  %v318_v30 = vmul.f32 %v918_v22, %v1210_v13 }
  0xd2   : > { %931 = vrsqrt.f32 %v295_v26 }
  0xd3   : > { %v920_v8 = vpop.eup %919  ;;  %v768_v31 = vpack.c.bf16 %v319_v23, %v318_v30  ;;  %933 = vrsqrt.f32 %v294_v27 }
  0xd4   : > { %v922_v32 = vpop.eup %921  ;;  %v321_v9 = vmul.f32 %v920_v8, %v1216_v16 }
  0xd5   : > { %792 = vst [vmem:[#allocation2 + $0x18] sm:$0xff] %v768_v31   ;;  %v320_v33 = vmul.f32 %v922_v32, %v1218_v17 }
  0xd7   : > { %v924_v34 = vpop.eup %923  ;;  %v773_v35 = vpack.c.bf16 %v321_v9, %v320_v33 }
  0xd8   : > { %v926_v36 = vpop.eup %925  ;;  %v323_v12 = vmul.f32 %v924_v34, %v1224_v20 }
  0xd9   : > { %793 = vst [vmem:[#allocation2 + $0x20] sm:$0xff] %v773_v35   ;;  %v322_v37 = vmul.f32 %v926_v36, %v1226_v21 }
  0xdb   : > { %v928_v38 = vpop.eup %927  ;;  %v778_v13 = vpack.c.bf16 %v323_v12, %v322_v37 }
  0xdc   : > { %v930_v39 = vpop.eup %929  ;;  %v325_v40 = vmul.f32 %v928_v38, %v1232_v24 }
  0xdd   : > { %794 = vst [vmem:[#allocation2 + $0x28] sm:$0xff] %v778_v13   ;;  %v324_v41 = vmul.f32 %v930_v39, %v1234_v25 }
  0xdf   : > { %v932_v16 = vpop.eup %931  ;;  %v783_v42 = vpack.c.bf16 %v325_v40, %v324_v41 }
  0xe0   : > { %v934_v43 = vpop.eup %933  ;;  %v327_v17 = vmul.f32 %v932_v16, %v1240_v28 }
  0xe1   : > { %795 = vst [vmem:[#allocation2 + $0x30] sm:$0xff] %v783_v42   ;;  %v326_v44 = vmul.f32 %v934_v43, %v1242_v29 }
  0xe3   : > { %v788_v20 = vpack.c.bf16 %v327_v17, %v326_v44 }
  0xe5   : > { %796 = vst [vmem:[#allocation2 + $0x38] sm:$0xff] %v788_v20  }
  0xe6 PF: > { %v411_v21 = vld [vmem:[%s1171_s9] sm:$0xff]  ;;  %v1069_v46 = vmov 0.0   ;;  %v939_v29 = vld [vmem:[#allocation2 + $0x28] sm:$0xff]   ;;  %vm1070_vm0 = vmmov 0   ;;  %v941_v48 = vld [vmem:[#allocation2 + $0x18] sm:$0xff]   ;;  %v1071_v50 = vmov 0   ;;  %v525_v56 = vlaneseq }
  0xe7   : > { %v412_v24 = vmul.f32 %v411_v21, %v411_v21  ;;  %806 = vmatprep.subr.bf16.mxu0 %v1069_v46  ;;  %v940_v47 = vld [vmem:[#allocation2 + $0x20] sm:$0xff]   ;;  %822 = vmatprep.mubr.msk.bf16.mxu0 %vm1070_vm0, %v1069_v46  ;;  %v942_v51 = vld [vmem:[#allocation2 + $0x10] sm:$0xff]   ;;  %v943_v52 = vld [vmem:[#allocation2 + $0x8] sm:$0xff]   ;;  %p728_p6 = scmp.ne.s32.totalorder %s1049_s15, 1 }
  0xe8   : > { %v938_v28 = vld [vmem:[#allocation2 + $0x30] sm:$0xff]   ;;  %v524_v49 = vld [vmem:[%s1176_s20] sm:$0xff]  ;;  %935 = vset.pattern.permute.xlu0 %v1071_v50  ;;  %936 = vset.pattern.permute.xlu1 %v1071_v50  ;;  %v526_v59 = vand.u32 127, %v525_v56 }
  0xe9   : > { %413 = vadd.xlane.f32.xlu0 %v412_v24  ;;  %v944_v53 = vld [vmem:[#allocation2] sm:$0xff]   ;;  %vm531_vm2 = vcmp.lt.s32.totalorder %v524_v49, 0 }
  0xea   : > { %v566_v11 = vld [vmem:[#allocation5] sm:$0x1]  ;;  %v535_v19 = vsel %vm531_vm2, 1, %v1071_v50  ;;  %v534_v36 = vld [vmem:[#allocation4] sm:$0x1] }
  0xeb   : > { %v556_v43 = vld [vmem:[#allocation3] sm:$0x1] }
  0xec   : > { %v937_v25 = vld [vmem:[#allocation2 + $0x38] sm:$0xff]  }
  0xed   : > { %807 = vmatpush3.bf16.xpose.msra.mxu0 %v937_v25 }
  0xee   : > { %808 = vmatprep.subr.bf16.mxu0 %v1069_v46 }
  0xf5   : > { %809 = vmatpush3.bf16.xpose.msra.mxu0 %v938_v28 }
  0xf6   : > { %810 = vmatprep.subr.bf16.mxu0 %v1069_v46 }
  0xfd   : > { %811 = vmatpush3.bf16.xpose.msra.mxu0 %v939_v29 }
  0xfe   : > { %812 = vmatprep.subr.bf16.mxu0 %v1069_v46 }
  0xff   : > { %528 = vperm.xlu0 %935, %v524_v49  }
 0x105   : > { %813 = vmatpush3.bf16.xpose.msra.mxu0 %v940_v47 }
 0x106   : > { %814 = vmatprep.subr.bf16.mxu0 %v1069_v46 }
 0x10d   : > { %815 = vmatpush3.bf16.xpose.msra.mxu0 %v941_v48 }
 0x10e   : > { %816 = vmatprep.subr.bf16.mxu0 %v1069_v46 }
 0x115   : > { %817 = vmatpush3.bf16.xpose.msra.mxu0 %v942_v51 }
 0x116   : > { %818 = vmatprep.subr.bf16.mxu0 %v1069_v46 }
 0x11d   : > { %819 = vmatpush3.bf16.xpose.msra.mxu0 %v943_v52 }
 0x11e   : > { %820 = vmatprep.subr.bf16.mxu0 %v1069_v46 }
 0x125   : > { %821 = vmatpush3.bf16.xpose.msra.mxu0 %v944_v53 }
 0x172   : > { %v414_v54 = vpop.xlane.xlu0 %413 }
 0x173   : > { %v415_v55 = vadd.f32 1e-12, %v414_v54 }
 0x175   : > { %945 = vrsqrt.f32 %v415_v55 }
 0x17a   : > { %v529_v61 = vpop.permute.xlu0 %528 }
 0x17b   : > { %vm530_vm1 = vcmp.eq.s32.totalorder %v526_v59, %v529_v61 }
 0x17c   : > { %v567_v63 = vsel %vm530_vm1, 1.0, %v1069_v46 }
 0x17d   : > { %v568_v3 = vrot.slane %v567_v63, 4 }
 0x17f   : > { %v569_v4 = vadd.f32 %v568_v3, %v567_v63 }
 0x181   : > { %v570_v6 = vrot.slane %v569_v4, 2 }
 0x182   : > { %v946_v57 = vpop.eup %945 }
 0x183   : > { %v417_v58 = vmul.f32 32.0, %v946_v57  ;;  %v571_v7 = vadd.f32 %v570_v6, %v569_v4 }
 0x185   : > { %v418_v60 = vmul.f32 %v417_v58, %v411_v21  ;;  %v572_v10 = vrot.slane %v571_v7, 1 }
 0x187   : > { %v419_v62 = vpack.c.bf16 %v418_v60, %v418_v60  ;;  %v573_v14 = vadd.f32 %v572_v10, %v571_v7 }
 0x189   : > { %823 = vmatmul.mubr.bf16.vlgmr.msra.gmra.mxu0 %v419_v62  ;;  %v574_v0 = vadd.f32 %v573_v14, %v566_v11 }
 0x18b   : > { %575 = vst [vmem:[#allocation5] sm:$0x1] %v574_v0 }
 0x249   : > { %v518_v15 = vpop.f32.mrf.mxu0 }
 0x24a   : > { %v550_v2 = vsel %vm530_vm1, %v518_v15, 0.0  ;;  %v532_v22 = vmul.f32 1.442695, %v518_v15 }
 0x24b   : > { %v824_v1 = vpop.f32.mrf.mxu0  ;;  %551 = vadd.xlane.f32.xlu1 %v550_v2 }
 0x24c   : > { %947 = vpow2.f32 %v532_v22 }
 0x24d   : > { %v521_v18 = vpop.f32.mrf.mxu0 }
 0x24f   : > { %v825_v5 = vpop.f32.mrf.mxu0 }
 0x259   : > { %v948_v8 = vpop.eup %947 }
 0x25c   : > { %537 = vperm.xlu1 %936, %v535_v19  }
 0x2d4   : > { %v552_v23 = vpop.xlane.xlu1 %551 }
 0x2d5   : > { %v553_v26 = vsub.f32 0.0, %v552_v23 }
 0x2d7   : > { %v554_v27 = vmul.f32 1.442695, %v553_v26 }
 0x2d8   : > { %v538_v30 = vpop.permute.xlu1 %537 }
 0x2d9   : > { %949 = vpow2.f32 %v554_v27  ;;  %vm539_vm3 = vcmp.eq.s32.totalorder %v538_v30, 1 }
 0x2da   : > { %vm540_vm4 = vmor %vm530_vm1, %vm539_vm3 }
 0x2db   : > { %v541_v31 = vsel %vm540_vm4, 0.0, %v948_v8 }
 0x2dc   : > { %v542_v32 = vrot.slane %v541_v31, 4 }
 0x2de   : > { %v543_v9 = vadd.f32 %v542_v32, %v541_v31 }
 0x2e0   : > { %v544_v33 = vrot.slane %v543_v9, 2 }
 0x2e2   : > { %v545_v34 = vadd.f32 %v544_v33, %v543_v9 }
 0x2e4   : > { %v546_v35 = vrot.slane %v545_v34, 1 }
 0x2e6   : > { %v950_v12 = vpop.eup %949  ;;  %v547_v37 = vadd.f32 %v546_v35, %v545_v34 }
 0x2e7   : > { %v557_v38 = vsel %vm530_vm1, %v950_v12, 0.0 }
 0x2e8   : > { %v558_v13 = vrot.slane %v557_v38, 4  ;;  %v548_v39 = vadd.f32 %v547_v37, %v534_v36 }
 0x2ea   : > { %v559_v40 = vadd.f32 %v558_v13, %v557_v38  ;;  %549 = vst [vmem:[#allocation4] sm:$0x1] %v548_v39 }
 0x2ec   : > { %v560_v41 = vrot.slane %v559_v40, 2 }
 0x2ee   : > { %v561_v16 = vadd.f32 %v560_v41, %v559_v40 }
 0x2f0   : > { %v562_v42 = vrot.slane %v561_v16, 1 }
 0x2f2   : > { %v563_v17 = vadd.f32 %v562_v42, %v561_v16  ;;  %579 = sbr.rel (%p728_p6) target bundleno = 767 (0x2ff), region = 41 }
 0x2f4   : > { %v564_v44 = vadd.f32 %v563_v17, %v556_v43 }
 0x2f6   : > { %565 = vst [vmem:[#allocation3] sm:$0x1] %v564_v44 }
 0x2f7   : > { %v583_v45 = vld [vmem:[#allocation4] sm:$0x1]  ;;  %v1072_v21 = vmov 0.0   ;;  %v585_v24 = vld [vmem:[#allocation5] sm:$0x1] }
 0x2f8   : > { %580 = vst [vmem:[%s1178_s21] sm:$0xff] %v1072_v21 }
 0x2f9   : > { %584 = vst [vmem:[%s1178_s21 + $0x1] sm:$0x1] %v583_v45  ;;  %586 = vst [vmem:[%s1178_s21 + $0x2] sm:$0x1] %v585_v24 }
 0x2fd   : > { %v581_v20 = vld [vmem:[#allocation3] sm:$0x1] }
 0x2fe   : > { %582 = vst [vmem:[%s1178_s21] sm:$0x1] %v581_v20 }
 0x2ff PF: > { %s730_s4 = sshll.u32 %s1053_s16, 7  ;;  %s601_s9 = sshll.u32 %s1178_s21, 4  ;;  %s602_s9 = int_to_ptr.vmem [resolvable:$true] %s601_s9 }
 0x300   : > { %s599_s8 = scalar_lea.hbm %s1325_s3, %s730_s4  ;;  %s588_s10 = scalar_lea.sflag [#allocation8], %s178_s29 }
 0x301   : > { %s971_s11 = scalar_lea.vmem %s602_s9, 128  ;;  %s1073_s20 = smov [#allocation7]  }
 0x302   : > { %p972_p7 = scmp.ne.s32.totalorder %s602_s9, %s971_s11  ;;  %s975_s26 = sshll.u32 %s1073_s20, 4  ;;  %s976_s26 = int_to_ptr.vmem [resolvable:$false] %s975_s26 }
 0x303   : > { %s977_s27 = scalar_lea.vmem %s976_s26, 256  ;;  %p978_p11 = scmp.lt.s32.totalorder %s602_s9, %s976_s26 }
 0x304   : > { %p973_p8 = pnand %p972_p7, %p1143_p3  ;;  %p979_p12 = scmp.lt.s32.totalorder %s977_s27, %s971_s11 }
 0x306   : > { %p974_p10 = pneg %p973_p8  ;;  %p980_p13 = por %p979_p12, %p978_p11 }
 0x308   : > { %p981_p0 = pnand %p980_p13, %p974_p10 }
 0x30a   : > { %984 = shalt.err (!%p981_p0)
}
 0x30b   : > { %s985_s16 = scalar_lea.hbm %s599_s8, 128  ;;  %s989_s30 = scalar_lea.hbm %s1325_s3, 256 }
 0x30c   : > { %p986_p1 = scmp.ne.s32.totalorder %s599_s8, %s985_s16  ;;  %p990_p5 = scmp.lt.s32.totalorder %s599_s8, %s1325_s3 }
 0x30d   : > { %p991_p6 = scmp.lt.s32.totalorder %s989_s30, %s985_s16 }
 0x30e   : > { %p987_p2 = pnand %p986_p1, %p1143_p3 }
 0x30f   : > { %p992_p7 = por %p991_p6, %p990_p5 }
 0x310   : > { %p988_p4 = pneg %p987_p2 }
 0x312   : > { %p993_p8 = pnand %p992_p7, %p988_p4 }
 0x314   : > { %996 = shalt.err (!%p993_p8)
}
 0x315   : > { %826 = dma.vmem_to_hbm [thread:$0]  (%p1143_p3), %s602_s9, 128, %s599_s8, %s588_s10  }
 0x316 PF: > { %p832_p10 = scmp.ge.s32.totalorder %s1065_s19, 2  ;;  %s613_s4 = sand.u32 1, %s1037_s12  }
 0x317   : > { %s614_s15 = scalar_lea.sflag [#allocation8], %s613_s4 }
 0x318   : > { %p829_p11 = pnand %p832_p10, %p1153_p9 }
 0x31a   : > { %p830_p12 = pneg %p829_p11 }
 0x31c   : > { %1032 = dma.done.wait (%p830_p12), %s614_s15, 128  }
 0x31d   : > { %1034 = vsyncadd (%p830_p12), %s614_s15, 4294967168  ;;  %s16_s19 = sadd.s32 1, %s1065_s19   ;;  %s1328_s12 = smov %s1041_s13 }
 0x31e   : > { %p13_p13 = scmp.ge.s32.totalorder %s16_s19, 6   ;;  %s1329_s13 = smov %s1045_s14 }
 0x31f   : > { %s1330_s14 = smov %s1161_s28  ;;  %s1331_s15 = smov %s1057_s17 }
 0x320   : > { %s1332_s16 = smov %s1061_s18  ;;  %s1333_s17 = smov %s1336_s22 }
 0x321   : > { %s1334_s18 = smov %s1340_s23  ;;  %15 = sbr.rel (!%p13_p13) target bundleno = 5 (0x5), region = 79 }
 0x326   :  { %619 = vsyncpa [#allocation8], 1 }
 0x327   :  { %621 = vsyncpa [#allocation8 + $0x1], 1 }
 0x328   :  { %622 = vsyncmov [#allocation6] }
 0x32b   :  { %s623_s24 = vpop.sfrf %622 }
 0x32c   :  { %p733_p3 = scmp.ne.s32.totalorder %s623_s24, 0 }
 0x32e   :  { %627 = shalt.err (%p733_p3)  }

</bundles_post_ra>
